<compile_context>
chip_gen: v6e
topology: v6e:2x2x1
jax: 0.10.0
libtpu: 0.0.40
codegen_flags: <defaults>
</compile_context>

<pallas_src>
import math

import jax
import jax.numpy as jnp
import numpy as np
from jax.experimental import pallas as pl
from jax.experimental.pallas import tpu as pltpu


_VMEM_LIMIT_BYTES = 40 << 20   # raised scoped-VMEM limit; still safe on v7x (64 MiB physical)
_TILE_VMEM_BUDGET = 28 << 20   # budget for the double-buffered in/out row tiles + resident W


def rot_kernel(x_ref, w_ref, o_ref):
    # x_ref: (TILE_M, L) packed input rows;  w_ref: (L, L) fused block-diagonal rotation.
    o_ref[...] = jnp.dot(
        x_ref[...],
        w_ref[...],
        preferred_element_type=jnp.float32,
        precision=jax.lax.Precision.HIGHEST,   # full-f32 contraction -> matches f32 reference
    ).astype(o_ref.dtype)


def _packing(nodes):
    """Pick (nodes_pad, P, L) so L = P * nodes_pad is a multiple of 128 (lane-dense output),
    with P logical feature rows packed per 128-lane row."""
    if nodes <= 128:
        nodes_pad = 1
        while nodes_pad < nodes:
            nodes_pad *= 2            # next power of two -> divides 128
        P = 128 // nodes_pad
    else:
        nodes_pad = -(-nodes // 128) * 128
        P = 1
    return nodes_pad, P, P * nodes_pad


def _build_rotation_matrix(nodes, angles, pairs, outp_pairs):
    """W such that x @ W == rotate(x, angles, pairs, outp_pairs) for permutation outp_pairs."""
    c = jnp.cos(angles.astype(jnp.float32))          # (half,)
    s = jnp.sin(angles.astype(jnp.float32))          # (half,)
    eye = jnp.eye(nodes, dtype=jnp.float32)
    gi = eye[:, pairs[:, 0]]                         # (nodes, half)  x @ gi == x[..., pairs[:,0]]
    gj = eye[:, pairs[:, 1]]                         # (nodes, half)
    si = eye[outp_pairs[:, 0], :]                    # (half, nodes)  scatter rows -> outp_pairs[:,0]
    sj = eye[outp_pairs[:, 1], :]                    # (half, nodes)
    written = jnp.zeros((nodes,), jnp.float32).at[outp_pairs.reshape(-1)].set(1.0)
    keep = 1.0 - written                             # columns not overwritten keep original x
    # y = x*keep + (c*xi - s*xj) @ si + (c*xj + s*xi) @ sj
    return (
        jnp.diag(keep)
        + gi @ (c[:, None] * si + s[:, None] * sj)
        + gj @ (c[:, None] * sj - s[:, None] * si)
    )


def build_w_blk(nodes, angles, pairs, outp_pairs, dtype):
    """Fused, packed (L, L) rotation matrix.  Depends only on module parameters; build it
    once per parameter update (or jit the forward so it fuses / constant-folds)."""
    nodes_pad, P, _ = _packing(nodes)
    W = _build_rotation_matrix(nodes, angles, pairs, outp_pairs)
    if nodes_pad != nodes:
        W = jnp.eye(nodes_pad, dtype=jnp.float32).at[:nodes, :nodes].set(W)
    if P > 1:
        W = jnp.kron(jnp.eye(P, dtype=jnp.float32), W)   # (L, L) block-diagonal
    return W.astype(dtype)


def _pick_tile(m_packed, L, itemsize, tile_m):
    sub = {4: 8, 2: 16, 1: 32}.get(itemsize, 8)      # sublane packing per dtype
    if m_packed <= sub:
        return m_packed                               # block == full row extent (legal)
    # VMEM cap: 2 double-buffered (in+out) row tiles + resident W stay under budget.
    cap = (_TILE_VMEM_BUDGET - 2 * L * L * itemsize) // (4 * L * itemsize)
    tile = min(int(tile_m), int(cap))
    # Megacore floor: keep >= ~4 grid steps so the "parallel" axis actually shards across
    # both v7x TensorCores while still double-buffering.
    if m_packed >= 4 * sub:
        tile = min(tile, m_packed // 4)
    tile = max(sub, (tile // sub) * sub)
    tile = min(tile, (m_packed // sub) * sub)         # never exceed the row extent
    return tile


def apply_rotation(x, W_blk, tile_m=8192):
    """x: (..., nodes) -> rotated output; streams packed row tiles through one MXU pass."""
    nodes = x.shape[-1]
    lead_shape = x.shape[:-1]
    dtype = x.dtype
    itemsize = jnp.dtype(dtype).itemsize
    nodes_pad, P, L = _packing(nodes)
    M = int(math.prod(lead_shape)) if lead_shape else 1

    x2d = x.reshape(M, nodes)
    feat_pad = nodes_pad - nodes
    m_packed = -(-M // P)                         # ceil(M / P) packed 128-lane rows
    row_pad = m_packed * P - M                    # <= P-1 rows, only for the packing reshape
    if feat_pad or row_pad:
        x2d = jnp.pad(x2d, ((0, row_pad), (0, feat_pad)))
    x_packed = x2d.reshape(m_packed, L)

    tile = _pick_tile(m_packed, L, itemsize, tile_m)
    grid = (pl.cdiv(m_packed, tile),)             # ragged final block is masked by Pallas

    out_packed = pl.pallas_call(
        rot_kernel,
        out_shape=jax.ShapeDtypeStruct((m_packed, L), dtype),
        grid=grid,
        in_specs=[
            pl.BlockSpec((tile, L), lambda i: (i, 0)),    # streamed, double-buffered row tiles
            pl.BlockSpec((L, L), lambda i: (0, 0)),       # resident fused rotation matrix
        ],
        out_specs=pl.BlockSpec((tile, L), lambda i: (i, 0)),
        compiler_params=pltpu.CompilerParams(
            dimension_semantics=("parallel",),
            vmem_limit_bytes=_VMEM_LIMIT_BYTES,
        ),
    )(x_packed, W_blk)

    out2d = out_packed.reshape(m_packed * P, nodes_pad)
    if feat_pad:
        out2d = out2d[:, :nodes]
    if row_pad:
        out2d = out2d[:M]
    return out2d.reshape(*lead_shape, nodes)


def rotational_forward(x, angles, pairs, outp_pairs, tile_m=8192):
    """Pallas implementation of Rotational.forward for x of shape (..., nodes)."""
    nodes = x.shape[-1]
    W_blk = build_w_blk(nodes, angles, pairs, outp_pairs, x.dtype)
    return apply_rotation(x, W_blk, tile_m=tile_m)


def check_outp_pairs(outp_pairs):
    """Host-side check: the scatter-as-matmul is equivalent to `.at[...] = ...` semantics
    only if each output index is written at most once (true for torch.randperm buffers)."""
    flat = np.asarray(outp_pairs).reshape(-1)
    assert len(np.unique(flat)) == flat.size, "outp_pairs must not repeat indices"


def rotational_reference(x, angles, pairs, outp_pairs):
    """Pure-JAX replica of the PyTorch rotate.forward semantics."""
    c = jnp.cos(angles)
    s = jnp.sin(angles)
    xi = x[..., pairs[:, 0]]
    xj = x[..., pairs[:, 1]]
    yi = c * xi - s * xj
    yj = c * xj + s * xi
    out = x
    out = out.at[..., outp_pairs[:, 0]].set(yi)
    out = out.at[..., outp_pairs[:, 1]].set(yj)
    return out


if __name__ == "__main__":
    nodes = 32
    key = jax.random.PRNGKey(0)
    k_x, k_ang, k_pairs, k_opairs, k_x2 = jax.random.split(key, 5)

    # Deterministic "module parameters/buffers" (torch.randn / torch.randperm analogues).
    angles = jax.random.normal(k_ang, (nodes // 2,), dtype=jnp.float32)
    pairs = jax.random.permutation(k_pairs, nodes).reshape(-1, 2)
    outp_pairs = jax.random.permutation(k_opairs, nodes).reshape(-1, 2)
    check_outp_pairs(outp_pairs)

    fwd = jax.jit(rotational_forward, static_argnames=("tile_m",))

    # Small shape consistent with the module (batch=2, seq=8, hidden=nodes=32).
    x = jax.random.normal(k_x, (2, 8, nodes), dtype=jnp.float32)
    out = jax.block_until_ready(fwd(x, angles, pairs, outp_pairs))
    ref = rotational_reference(x, angles, pairs, outp_pairs)
    assert out.shape == ref.shape and out.dtype == ref.dtype
    assert jnp.allclose(out, ref, atol=1e-5, rtol=1e-5), "mismatch vs reference (small)"

    # Larger ragged shape: exercises the multi-step grid, the megacore floor, the
    # <=P-1-row packing pad, and the masked (partial) final block.
    x_big = jax.random.normal(k_x2, (3, 347, nodes), dtype=jnp.float32)
    out_big = jax.block_until_ready(fwd(x_big, angles, pairs, outp_pairs))
    ref_big = rotational_reference(x_big, angles, pairs, outp_pairs)
    assert jnp.allclose(out_big, ref_big, atol=1e-5, rtol=1e-5), "mismatch vs reference (big)"

    print("KERNEL_OK")
</pallas_src>

<mosaic_0001>
module attributes {stable_mosaic.version = 11 : i64} {
  func.func @rot_kernel(%arg0: i32, %arg1: memref<4x128xf32, #tpu.memory_space<vmem>>, %arg2: memref<128x128xf32, #tpu.memory_space<vmem>>, %arg3: memref<4x128xf32, #tpu.memory_space<vmem>>) attributes {dimension_semantics = [#tpu.dimension_semantics<parallel>], iteration_bounds = array<i64: 1>, scalar_prefetch = 0 : i64, scratch_operands = 0 : i64, tpu.core_type = #tpu.core_type<tc>, window_params = [{transform_indices = @transform_0, window_bounds = array<i64: 4, 128>}, {pipeline_mode = #tpu.pipeline_mode<synchronous>, transform_indices = @transform_1, window_bounds = array<i64: 128, 128>}, {transform_indices = @transform_2, window_bounds = array<i64: 4, 128>}]} {
    %c0 = arith.constant 0 : index
    %c0_0 = arith.constant 0 : index
    %0 = vector.load %arg1[%c0, %c0_0] : memref<4x128xf32, #tpu.memory_space<vmem>>, vector<4x128xf32>
    %c0_1 = arith.constant 0 : index
    %c0_2 = arith.constant 0 : index
    %1 = vector.load %arg2[%c0_1, %c0_2] : memref<128x128xf32, #tpu.memory_space<vmem>>, vector<128x128xf32>
    %cst = arith.constant dense<0.000000e+00> : vector<4x128xf32>
    %2 = tpu.matmul %0, %1, %cst {dimension_numbers = #tpu.dot_dimension_numbers<[1], [0], [0], [1], [0, 0, 1, 1], [], []>, precision = #tpu.contract_precision<fp32>} : vector<4x128xf32>, vector<128x128xf32>, vector<4x128xf32> -> vector<4x128xf32>
    %c0_3 = arith.constant 0 : index
    %c0_4 = arith.constant 0 : index
    %3 = vector.load %arg3[%c0_3, %c0_4] : memref<4x128xf32, #tpu.memory_space<vmem>>, vector<4x128xf32>
    tpu.vector_store %arg3[%c0_3, %c0_4], %2 {strides = array<i32>} : memref<4x128xf32, #tpu.memory_space<vmem>>, vector<4x128xf32>,
    return
  }
  func.func @transform_0(%arg0: i32) -> (i32, i32) {
    %c0_i32 = arith.constant 0 : i32
    %c0_i32_0 = arith.constant 0 : i32
    return %arg0, %c0_i32 : i32, i32
  }
  func.func @transform_1(%arg0: i32) -> (i32, i32) {
    %c0_i32 = arith.constant 0 : i32
    %c0_i32_0 = arith.constant 0 : i32
    %c0_i32_1 = arith.constant 0 : i32
    return %c0_i32, %c0_i32_0 : i32, i32
  }
  func.func @transform_2(%arg0: i32) -> (i32, i32) {
    %c0_i32 = arith.constant 0 : i32
    %c0_i32_0 = arith.constant 0 : i32
    return %arg0, %c0_i32 : i32, i32
  }
}

</mosaic_0001>

<bundles_post_ra>
// kernel: rotational_forward.1
= control target key start
LH: loop header
LB: loop body
LE: loop exit
PB: predicated region body
PF: predicated region fallthrough
CT: control target
= control target key end

     0   :  { %v988_v0 = vmov 0.0   ;;  %vm989_vm0 = vmmov 0   ;;  %s1422_s1 = inlined_call_operand.vmem [shape: f32[128,128], index: 1, kind: input, shape index: {}]   ;;  %s1423_s0 = inlined_call_operand.vmem [shape: f32[4,128], index: 0, kind: input, shape index: {}]   ;;  %s1424_s2 = inlined_call_operand.vmem [shape: f32[4,128], index: 2, kind: output, shape index: {}]  }
   0x1   :  { %776 = vmatprep.subr.mxu0 %v988_v0  ;;  %v27_v1 = vld [vmem:[%s1422_s1 + $0x78] sm:$0xff]  ;;  %v26_v2 = vld [vmem:[%s1422_s1 + $0x70] sm:$0xff]  ;;  %v25_v3 = vld [vmem:[%s1422_s1 + $0x68] sm:$0xff]  ;;  %811 = vmatprep.subr.mxu1 %v988_v0 }
   0x2   :  { %v1016_v4 = vand.u32 4294901760, %v27_v1  ;;  %v1018_v5 = vand.u32 4294901760, %v26_v2  ;;  %v1020_v6 = vand.u32 4294901760, %v25_v3  ;;  %v24_v7 = vld [vmem:[%s1422_s1 + $0x60] sm:$0xff]  ;;  %v23_v8 = vld [vmem:[%s1422_s1 + $0x58] sm:$0xff]  ;;  %v22_v9 = vld [vmem:[%s1422_s1 + $0x50] sm:$0xff]  ;;  %808 = vmatprep.mubr.msk.f32.mxu0 %vm989_vm0, %v988_v0  ;;  %843 = vmatprep.mubr.msk.f32.mxu1 %vm989_vm0, %v988_v0 }
   0x3   :  { %v1035_v10 = vand.u32 4294901760, %v24_v7  ;;  %v1037_v11 = vand.u32 4294901760, %v23_v8  ;;  %v1039_v12 = vand.u32 4294901760, %v22_v9  ;;  %v21_v13 = vld [vmem:[%s1422_s1 + $0x48] sm:$0xff]  ;;  %v20_v14 = vld [vmem:[%s1422_s1 + $0x40] sm:$0xff]  ;;  %v19_v19 = vld [vmem:[%s1422_s1 + $0x38] sm:$0xff] }
   0x4   :  { %777 = vmatpush3.msra.mxu0 %v1016_v4  ;;  %v1049_v15 = vsub.f32 %v27_v1, %v1016_v4  ;;  %v1052_v16 = vsub.f32 %v26_v2, %v1018_v5  ;;  %v1054_v17 = vand.u32 4294901760, %v21_v13  ;;  %v1057_v18 = vsub.f32 %v25_v3, %v1020_v6  ;;  %v18_v26 = vld [vmem:[%s1422_s1 + $0x30] sm:$0xff]  ;;  %v17_v36 = vld [vmem:[%s1422_s1 + $0x28] sm:$0xff]  ;;  %v16_v41 = vld [vmem:[%s1422_s1 + $0x20] sm:$0xff] }
   0x5   :  { %778 = vmatprep.subr.mxu0 %v988_v0  ;;  %v1064_v20 = vsub.f32 %v24_v7, %v1035_v10  ;;  %v1067_v21 = vsub.f32 %v23_v8, %v1037_v11  ;;  %v1073_v25 = vand.u32 4294901760, %v20_v14  ;;  %v1080_v28 = vand.u32 4294901760, %v19_v19  ;;  %v15_v49 = vld [vmem:[%s1422_s1 + $0x18] sm:$0xff]  ;;  %v11_v50 = vld [vmem:[%s1423_s0] sm:$0xf]  ;;  %v14_v54 = vld [vmem:[%s1422_s1 + $0x10] sm:$0xff] }
   0x6   :  { %779 = vmatpush3.msra.mxu0 %v1018_v5  ;;  %v122_v22 = vand.u32 4294901760, %v1049_v15  ;;  %v129_v23 = vand.u32 4294901760, %v1052_v16  ;;  %v136_v24 = vand.u32 4294901760, %v1057_v18  ;;  %v1084_v30 = vsub.f32 %v22_v9, %v1039_v12  ;;  %v13_v60 = vld [vmem:[%s1422_s1 + $0x8] sm:$0xff]  ;;  %v12_v7 = vld [vmem:[%s1422_s1] sm:$0xff] }
   0x7   :  { %780 = vmatprep.subr.mxu0 %v988_v0  ;;  %v143_v27 = vand.u32 4294901760, %v1064_v20  ;;  %v150_v29 = vand.u32 4294901760, %v1067_v21  ;;  %v1097_v34 = vsub.f32 %v21_v13, %v1054_v17  ;;  %v1100_v35 = vand.u32 4294901760, %v18_v26 }
   0x8   :  { %781 = vmatpush3.msra.mxu0 %v1020_v6  ;;  %v123_v31 = vsub.f32 %v1049_v15, %v122_v22  ;;  %v130_v32 = vsub.f32 %v1052_v16, %v129_v23  ;;  %v137_v33 = vsub.f32 %v1057_v18, %v136_v24  ;;  %v157_v40 = vand.u32 4294901760, %v1084_v30 }
   0x9   :  { %782 = vmatprep.subr.mxu0 %v988_v0  ;;  %v144_v39 = vsub.f32 %v1064_v20, %v143_v27  ;;  %v151_v42 = vsub.f32 %v1067_v21, %v150_v29  ;;  %v1118_v43 = vsub.f32 %v20_v14, %v1073_v25  ;;  %v1121_v45 = vand.u32 4294901760, %v17_v36 }
   0xa   :  { %783 = vmatpush3.msra.mxu0 %v1035_v10  ;;  %v124_v37 = vand.u32 4294901760, %v123_v31  ;;  %v131_v38 = vand.u32 4294901760, %v130_v32  ;;  %v138_v44 = vand.u32 4294901760, %v137_v33  ;;  %v164_v46 = vand.u32 4294901760, %v1097_v34 }
   0xb   :  { %784 = vmatprep.subr.mxu0 %v988_v0  ;;  %v1125_v47 = vsub.f32 %v19_v19, %v1080_v28  ;;  %v1129_v48 = vand.u32 4294901760, %v16_v41  ;;  %v145_v51 = vand.u32 4294901760, %v144_v39  ;;  %v158_v52 = vsub.f32 %v1084_v30, %v157_v40 }
   0xc   :  { %785 = vmatpush3.msra.mxu0 %v1037_v11  ;;  %812 = vmatpush3.msra.mxu1 %v124_v37  ;;  %v171_v53 = vand.u32 4294901760, %v1118_v43  ;;  %v1146_v55 = vsub.f32 %v18_v26, %v1100_v35  ;;  %v152_v56 = vand.u32 4294901760, %v151_v42  ;;  %v165_v58 = vsub.f32 %v1097_v34, %v164_v46 }
   0xd   :  { %786 = vmatprep.subr.mxu0 %v988_v0  ;;  %813 = vmatprep.subr.mxu1 %v988_v0  ;;  %v178_v57 = vand.u32 4294901760, %v1125_v47  ;;  %v1155_v59 = vand.u32 4294901760, %v15_v49  ;;  %v1161_v61 = vsub.f32 %v17_v36, %v1121_v45  ;;  %v1163_v62 = vand.u32 4294901760, %v11_v50 }
   0xe   :  { %787 = vmatpush3.msra.mxu0 %v1039_v12  ;;  %814 = vmatpush3.msra.mxu1 %v131_v38  ;;  %v1167_v63 = vand.u32 4294901760, %v14_v54  ;;  %v159_v1 = vand.u32 4294901760, %v158_v52  ;;  %v172_v2 = vsub.f32 %v1118_v43, %v171_v53  ;;  %v185_v3 = vand.u32 4294901760, %v1146_v55 }
   0xf   :  { %788 = vmatprep.subr.mxu0 %v988_v0  ;;  %815 = vmatprep.subr.mxu1 %v988_v0  ;;  %v1178_v8 = vsub.f32 %v16_v41, %v1129_v48  ;;  %v179_v9 = vsub.f32 %v1125_v47, %v178_v57  ;;  %v1185_v13 = vand.u32 4294901760, %v13_v60  ;;  %v166_v14 = vand.u32 4294901760, %v165_v58 }
  0x10   :  { %789 = vmatpush3.msra.mxu0 %v1054_v17  ;;  %816 = vmatpush3.msra.mxu1 %v138_v44  ;;  %v192_v19 = vand.u32 4294901760, %v1161_v61  ;;  %v1190_v26 = vsub.f32 %v11_v50, %v1163_v62  ;;  %v1193_v31 = vsub.f32 %v15_v49, %v1155_v59  ;;  %v1197_v32 = vand.u32 4294901760, %v12_v7 }
  0x11   :  { %790 = vmatprep.subr.mxu0 %v988_v0  ;;  %817 = vmatprep.subr.mxu1 %v988_v0  ;;  %v173_v33 = vand.u32 4294901760, %v172_v2  ;;  %v186_v36 = vsub.f32 %v1146_v55, %v185_v3  ;;  %v199_v37 = vand.u32 4294901760, %v1178_v8  ;;  %v1205_v38 = vsub.f32 %v14_v54, %v1167_v63 }
  0x12   :  { %791 = vmatpush3.msra.mxu0 %v1073_v25  ;;  %818 = vmatpush3.msra.mxu1 %v145_v51  ;;  %v180_v39 = vand.u32 4294901760, %v179_v9  ;;  %v193_v41 = vsub.f32 %v1161_v61, %v192_v19  ;;  %v111_v42 = vand.u32 4294901760, %v1190_v26  ;;  %v206_v44 = vand.u32 4294901760, %v1193_v31 }
  0x13   :  { %792 = vmatprep.subr.mxu0 %v988_v0  ;;  %819 = vmatprep.subr.mxu1 %v988_v0  ;;  %v1216_v49 = vsub.f32 %v13_v60, %v1185_v13  ;;  %v187_v50 = vand.u32 4294901760, %v186_v36  ;;  %v200_v51 = vsub.f32 %v1178_v8, %v199_v37  ;;  %v213_v52 = vand.u32 4294901760, %v1205_v38 }
  0x14   :  { %793 = vmatpush3.msra.mxu0 %v1080_v28  ;;  %820 = vmatpush3.msra.mxu1 %v152_v56  ;;  %v1226_v54 = vsub.f32 %v12_v7, %v1197_v32  ;;  %v194_v56 = vand.u32 4294901760, %v193_v41  ;;  %v112_v58 = vsub.f32 %v1190_v26, %v111_v42  ;;  %v207_v60 = vsub.f32 %v1193_v31, %v206_v44 }
  0x15   :  { %794 = vmatprep.subr.mxu0 %v988_v0  ;;  %821 = vmatprep.subr.mxu1 %v988_v0  ;;  %v201_v2 = vand.u32 4294901760, %v200_v51  ;;  %v214_v7 = vsub.f32 %v1205_v38, %v213_v52 }
  0x16   :  { %795 = vmatpush3.msra.mxu0 %v1100_v35  ;;  %822 = vmatpush3.msra.mxu1 %v159_v1  ;;  %v220_v1 = vand.u32 4294901760, %v1216_v49  ;;  %v227_v9 = vand.u32 4294901760, %v1226_v54 }
  0x17   :  { %796 = vmatprep.subr.mxu0 %v988_v0  ;;  %823 = vmatprep.subr.mxu1 %v988_v0 }
  0x18   :  { %797 = vmatpush3.msra.mxu0 %v1121_v45  ;;  %824 = vmatpush3.msra.mxu1 %v166_v14  ;;  %v113_v14 = vand.u32 4294901760, %v112_v58  ;;  %v221_v36 = vsub.f32 %v1216_v49, %v220_v1  ;;  %v228_v41 = vsub.f32 %v1226_v54, %v227_v9 }
  0x19   :  { %798 = vmatprep.subr.mxu0 %v988_v0  ;;  %825 = vmatprep.subr.mxu1 %v988_v0 }
  0x1a   :  { %799 = vmatpush3.msra.mxu0 %v1129_v48  ;;  %826 = vmatpush3.msra.mxu1 %v173_v33  ;;  %v208_v33 = vand.u32 4294901760, %v207_v60  ;;  %v229_v51 = vand.u32 4294901760, %v228_v41 }
  0x1b   :  { %800 = vmatprep.subr.mxu0 %v988_v0  ;;  %827 = vmatprep.subr.mxu1 %v988_v0 }
  0x1c   :  { %801 = vmatpush3.msra.mxu0 %v1155_v59  ;;  %828 = vmatpush3.msra.mxu1 %v180_v39  ;;  %v215_v39 = vand.u32 4294901760, %v214_v7 }
  0x1d   :  { %802 = vmatprep.subr.mxu0 %v988_v0  ;;  %829 = vmatprep.subr.mxu1 %v988_v0 }
  0x1e   :  { %803 = vmatpush3.msra.mxu0 %v1167_v63  ;;  %830 = vmatpush3.msra.mxu1 %v187_v50  ;;  %v222_v50 = vand.u32 4294901760, %v221_v36 }
  0x1f   :  { %804 = vmatprep.subr.mxu0 %v988_v0  ;;  %831 = vmatprep.subr.mxu1 %v988_v0 }
  0x20   :  { %805 = vmatpush3.msra.mxu0 %v1185_v13  ;;  %832 = vmatpush3.msra.mxu1 %v194_v56 }
  0x21   :  { %806 = vmatprep.subr.mxu0 %v988_v0  ;;  %833 = vmatprep.subr.mxu1 %v988_v0 }
  0x22   :  { %807 = vmatpush3.msra.mxu0 %v1197_v32  ;;  %834 = vmatpush3.msra.mxu1 %v201_v2 }
  0x23   :  { %835 = vmatprep.subr.mxu1 %v988_v0  ;;  %846 = vmatprep.subr.mxu0 %v988_v0 }
  0x24   :  { %809 = vmatmul.mubr.f32.vlgmr.msra.gmra.mxu0 %v113_v14  ;;  %836 = vmatpush3.msra.mxu1 %v208_v33 }
  0x25   :  { %847 = vmatpush3.msra.mxu0 %v1049_v15  ;;  %837 = vmatprep.subr.mxu1 %v988_v0 }
  0x26   :  { %848 = vmatprep.subr.mxu0 %v988_v0  ;;  %838 = vmatpush3.msra.mxu1 %v215_v39 }
  0x27   :  { %849 = vmatpush3.msra.mxu0 %v1052_v16  ;;  %839 = vmatprep.subr.mxu1 %v988_v0 }
  0x28   :  { %850 = vmatprep.subr.mxu0 %v988_v0  ;;  %840 = vmatpush3.msra.mxu1 %v222_v50 }
  0x29   :  { %851 = vmatpush3.msra.mxu0 %v1057_v18  ;;  %841 = vmatprep.subr.mxu1 %v988_v0 }
  0x2a   :  { %852 = vmatprep.subr.mxu0 %v988_v0  ;;  %842 = vmatpush3.msra.mxu1 %v229_v51 }
  0x2b   :  { %853 = vmatpush3.msra.mxu0 %v1064_v20  ;;  %844 = vmatmul.mubr.f32.vlgmr.msra.gmra.mxu1 %v1163_v62 }
  0x2c   :  { %854 = vmatprep.subr.mxu0 %v988_v0  ;;  %881 = vmatprep.subr.mxu1 %v988_v0 }
  0x2d   :  { %855 = vmatpush3.msra.mxu0 %v1067_v21  ;;  %882 = vmatpush3.msra.mxu1 %v1016_v4 }
  0x2e   :  { %856 = vmatprep.subr.mxu0 %v988_v0  ;;  %883 = vmatprep.subr.mxu1 %v988_v0 }
  0x2f   :  { %857 = vmatpush3.msra.mxu0 %v1084_v30  ;;  %884 = vmatpush3.msra.mxu1 %v1018_v5 }
  0x30   :  { %858 = vmatprep.subr.mxu0 %v988_v0  ;;  %885 = vmatprep.subr.mxu1 %v988_v0 }
  0x31   :  { %859 = vmatpush3.msra.mxu0 %v1097_v34  ;;  %886 = vmatpush3.msra.mxu1 %v1020_v6 }
  0x32   :  { %860 = vmatprep.subr.mxu0 %v988_v0  ;;  %887 = vmatprep.subr.mxu1 %v988_v0 }
  0x33   :  { %861 = vmatpush3.msra.mxu0 %v1118_v43  ;;  %888 = vmatpush3.msra.mxu1 %v1035_v10 }
  0x34   :  { %862 = vmatprep.subr.mxu0 %v988_v0  ;;  %889 = vmatprep.subr.mxu1 %v988_v0 }
  0x35   :  { %863 = vmatpush3.msra.mxu0 %v1125_v47  ;;  %890 = vmatpush3.msra.mxu1 %v1037_v11 }
  0x36   :  { %864 = vmatprep.subr.mxu0 %v988_v0  ;;  %891 = vmatprep.subr.mxu1 %v988_v0 }
  0x37   :  { %865 = vmatpush3.msra.mxu0 %v1146_v55  ;;  %892 = vmatpush3.msra.mxu1 %v1039_v12 }
  0x38   :  { %866 = vmatprep.subr.mxu0 %v988_v0  ;;  %893 = vmatprep.subr.mxu1 %v988_v0 }
  0x39   :  { %867 = vmatpush3.msra.mxu0 %v1161_v61  ;;  %894 = vmatpush3.msra.mxu1 %v1054_v17 }
  0x3a   :  { %868 = vmatprep.subr.mxu0 %v988_v0  ;;  %895 = vmatprep.subr.mxu1 %v988_v0 }
  0x3b   :  { %869 = vmatpush3.msra.mxu0 %v1178_v8  ;;  %896 = vmatpush3.msra.mxu1 %v1073_v25 }
  0x3c   :  { %870 = vmatprep.subr.mxu0 %v988_v0  ;;  %897 = vmatprep.subr.mxu1 %v988_v0 }
  0x3d   :  { %871 = vmatpush3.msra.mxu0 %v1193_v31  ;;  %898 = vmatpush3.msra.mxu1 %v1080_v28 }
  0x3e   :  { %872 = vmatprep.subr.mxu0 %v988_v0  ;;  %899 = vmatprep.subr.mxu1 %v988_v0 }
  0x3f   :  { %873 = vmatpush3.msra.mxu0 %v1205_v38  ;;  %900 = vmatpush3.msra.mxu1 %v1100_v35 }
  0x40   :  { %874 = vmatprep.subr.mxu0 %v988_v0  ;;  %901 = vmatprep.subr.mxu1 %v988_v0 }
  0x41   :  { %875 = vmatpush3.msra.mxu0 %v1216_v49  ;;  %902 = vmatpush3.msra.mxu1 %v1121_v45 }
  0x42   :  { %876 = vmatprep.subr.mxu0 %v988_v0  ;;  %903 = vmatprep.subr.mxu1 %v988_v0 }
  0x43   :  { %877 = vmatpush3.msra.mxu0 %v1226_v54  ;;  %878 = vmatprep.mubr.msk.f32.mxu0 %vm989_vm0, %v988_v0 }
  0x44   :  { %904 = vmatpush3.msra.mxu1 %v1129_v48  ;;  %879 = vmatmul.mubr.f32.vlgmr.msra.gmra.mxu0 %v1190_v26 }
  0x45   :  { %905 = vmatprep.subr.mxu1 %v988_v0  ;;  %916 = vmatprep.subr.mxu0 %v988_v0 }
  0x46   :  { %906 = vmatpush3.msra.mxu1 %v1155_v59  ;;  %917 = vmatpush3.msra.mxu0 %v122_v22 }
  0x47   :  { %907 = vmatprep.subr.mxu1 %v988_v0  ;;  %918 = vmatprep.subr.mxu0 %v988_v0 }
  0x48   :  { %908 = vmatpush3.msra.mxu1 %v1167_v63  ;;  %919 = vmatpush3.msra.mxu0 %v129_v23 }
  0x49   :  { %909 = vmatprep.subr.mxu1 %v988_v0  ;;  %920 = vmatprep.subr.mxu0 %v988_v0 }
  0x4a   :  { %910 = vmatpush3.msra.mxu1 %v1185_v13  ;;  %921 = vmatpush3.msra.mxu0 %v136_v24 }
  0x4b   :  { %911 = vmatprep.subr.mxu1 %v988_v0  ;;  %922 = vmatprep.subr.mxu0 %v988_v0 }
  0x4c   :  { %912 = vmatpush3.msra.mxu1 %v1197_v32  ;;  %913 = vmatprep.mubr.msk.f32.mxu1 %vm989_vm0, %v988_v0 }
  0x4d   :  { %923 = vmatpush3.msra.mxu0 %v143_v27  ;;  %914 = vmatmul.mubr.f32.vlgmr.msra.gmra.mxu1 %v111_v42 }
  0x4e   :  { %924 = vmatprep.subr.mxu0 %v988_v0  ;;  %951 = vmatprep.subr.mxu1 %v988_v0 }
  0x4f   :  { %925 = vmatpush3.msra.mxu0 %v150_v29  ;;  %952 = vmatpush3.msra.mxu1 %v1016_v4 }
  0x50   :  { %926 = vmatprep.subr.mxu0 %v988_v0  ;;  %953 = vmatprep.subr.mxu1 %v988_v0 }
  0x51   :  { %927 = vmatpush3.msra.mxu0 %v157_v40  ;;  %954 = vmatpush3.msra.mxu1 %v1018_v5 }
  0x52   :  { %928 = vmatprep.subr.mxu0 %v988_v0  ;;  %955 = vmatprep.subr.mxu1 %v988_v0 }
  0x53   :  { %929 = vmatpush3.msra.mxu0 %v164_v46  ;;  %956 = vmatpush3.msra.mxu1 %v1020_v6 }
  0x54   :  { %930 = vmatprep.subr.mxu0 %v988_v0  ;;  %957 = vmatprep.subr.mxu1 %v988_v0 }
  0x55   :  { %931 = vmatpush3.msra.mxu0 %v171_v53  ;;  %958 = vmatpush3.msra.mxu1 %v1035_v10 }
  0x56   :  { %932 = vmatprep.subr.mxu0 %v988_v0  ;;  %959 = vmatprep.subr.mxu1 %v988_v0 }
  0x57   :  { %933 = vmatpush3.msra.mxu0 %v178_v57  ;;  %960 = vmatpush3.msra.mxu1 %v1037_v11 }
  0x58   :  { %934 = vmatprep.subr.mxu0 %v988_v0  ;;  %961 = vmatprep.subr.mxu1 %v988_v0 }
  0x59   :  { %935 = vmatpush3.msra.mxu0 %v185_v3  ;;  %962 = vmatpush3.msra.mxu1 %v1039_v12 }
  0x5a   :  { %936 = vmatprep.subr.mxu0 %v988_v0  ;;  %963 = vmatprep.subr.mxu1 %v988_v0 }
  0x5b   :  { %937 = vmatpush3.msra.mxu0 %v192_v19  ;;  %964 = vmatpush3.msra.mxu1 %v1054_v17 }
  0x5c   :  { %938 = vmatprep.subr.mxu0 %v988_v0  ;;  %965 = vmatprep.subr.mxu1 %v988_v0 }
  0x5d   :  { %939 = vmatpush3.msra.mxu0 %v199_v37  ;;  %966 = vmatpush3.msra.mxu1 %v1073_v25 }
  0x5e   :  { %940 = vmatprep.subr.mxu0 %v988_v0  ;;  %967 = vmatprep.subr.mxu1 %v988_v0 }
  0x5f   :  { %941 = vmatpush3.msra.mxu0 %v206_v44  ;;  %968 = vmatpush3.msra.mxu1 %v1080_v28 }
  0x60   :  { %942 = vmatprep.subr.mxu0 %v988_v0  ;;  %969 = vmatprep.subr.mxu1 %v988_v0 }
  0x61   :  { %943 = vmatpush3.msra.mxu0 %v213_v52  ;;  %970 = vmatpush3.msra.mxu1 %v1100_v35 }
  0x62   :  { %944 = vmatprep.subr.mxu0 %v988_v0  ;;  %971 = vmatprep.subr.mxu1 %v988_v0 }
  0x63   :  { %945 = vmatpush3.msra.mxu0 %v220_v1  ;;  %972 = vmatpush3.msra.mxu1 %v1121_v45 }
  0x64   :  { %946 = vmatprep.subr.mxu0 %v988_v0  ;;  %973 = vmatprep.subr.mxu1 %v988_v0 }
  0x65   :  { %947 = vmatpush3.msra.mxu0 %v227_v9  ;;  %948 = vmatprep.mubr.msk.f32.mxu0 %vm989_vm0, %v988_v0 }
  0x66   :  { %974 = vmatpush3.msra.mxu1 %v1129_v48  ;;  %949 = vmatmul.mubr.f32.vlgmr.msra.gmra.mxu0 %v1163_v62 }
  0x67   :  { %975 = vmatprep.subr.mxu1 %v988_v0  ;;  %983 = vmatprep.mubr.msk.f32.mxu1 %vm989_vm0, %v988_v0 }
  0x68   :  { %976 = vmatpush3.msra.mxu1 %v1155_v59 }
  0x69   :  { %977 = vmatprep.subr.mxu1 %v988_v0 }
  0x6a   :  { %978 = vmatpush3.msra.mxu1 %v1167_v63 }
  0x6b   :  { %979 = vmatprep.subr.mxu1 %v988_v0 }
  0x6c   :  { %980 = vmatpush3.msra.mxu1 %v1185_v13 }
  0x6d   :  { %981 = vmatprep.subr.mxu1 %v988_v0 }
  0x6e   :  { %982 = vmatpush3.msra.mxu1 %v1197_v32 }
  0x6f   :  { %984 = vmatmul.mubr.f32.vlgmr.msra.gmra.mxu1 %v1163_v62 }
  0xe4   :  { %v115_v4 = vpop.f32.mrf.mxu0 }
  0xe6   :  { %v810_v5 = vpop.f32.mrf.mxu0 }
  0xeb   :  { %v266_v6 = vpop.f32.mrf.mxu1 }
  0xec   :  { %v267_v18 = vadd.f32 %v266_v6, %v115_v4 }
  0xed   :  { %v845_v10 = vpop.f32.mrf.mxu1 }
 0x104   :  { %v370_v11 = vpop.f32.mrf.mxu0 }
 0x105   :  { %v371_v21 = vadd.f32 %v370_v11, %v267_v18 }
 0x106   :  { %v880_v12 = vpop.f32.mrf.mxu0 }
 0x10d   :  { %v459_v15 = vpop.f32.mrf.mxu1 }
 0x10e   :  { %v460_v22 = vadd.f32 %v459_v15, %v371_v21 }
 0x10f   :  { %v915_v16 = vpop.f32.mrf.mxu1 }
 0x126   :  { %v578_v17 = vpop.f32.mrf.mxu0 }
 0x127   :  { %v579_v23 = vadd.f32 %v578_v17, %v460_v22 }
 0x128   :  { %v950_v20 = vpop.f32.mrf.mxu0 }
 0x12f   :  { %v665_v24 = vpop.f32.mrf.mxu1 }
 0x130   :  { %v666_v0 = vadd.f32 %v665_v24, %v579_v23 }
 0x131   :  { %v985_v25 = vpop.f32.mrf.mxu1 }
 0x132   :  { %669 = vst [vmem:[%s1424_s2] sm:$0xf] %v666_v0 }

</bundles_post_ra>
